<compile_context>
chip_gen: v6e
topology: v6e:2x2x1
jax: 0.10.0
libtpu: 0.0.40
codegen_flags: <defaults>
</compile_context>

<pallas_src>
import functools

import numpy as np

import jax
import jax.numpy as jnp
from jax import lax
from jax.experimental import pallas as pl
from jax.experimental.pallas import tpu as pltpu


def _fused_double_conv_kernel(x_ref, w1_ref, w2_ref, mask_ref, o_ref, xpad2_ref,
                              *, H, W, NB):
    """One grid step = NB images; both conv+BN+ReLU layers fused.

    x_ref:     (NB, Cin, (H+2)*(W+2)+2)   zero-padded, row-flattened NCHW images
    w1_ref:    (Cmid, 9*Cin + 1)          layer-1 weights, BN scale folded, bias = last col
    w2_ref:    (Cout, 9*Cmid + 1)         layer-2 weights, BN scale folded, bias = last col
    mask_ref:  (Cmid, NB*H*(W+2))         0/1 mask: zero at the 2 junk columns per row
    o_ref:     (NB, Cout, H*(W+2))        padded conv output (wrapper drops junk columns)
    xpad2_ref: (Cmid, NB*((H+2)*(W+2)+2)) VMEM scratch: zero-padded flat layer-1 act
    """
    Wp = W + 2
    HWp = H * Wp
    pad_len = (H + 2) * Wp + 2
    Cmid = w1_ref.shape[0]
    taps = [dy * Wp + dx for dy in range(3) for dx in range(3)]   # k = dy*3 + dx
    ones_row = jnp.ones((1, NB * HWp), jnp.float32)               # bias row of im2col

    def im2col(tap_slice):
        # 9 contiguous lane slices of the flat zero-padded image per batch element,
        # concatenated into a single deep-K matmul operand (9*C + 1, NB*HWp).
        per_img = [jnp.concatenate([tap_slice(n, t) for t in taps], axis=0)
                   for n in range(NB)]
        m = per_img[0] if NB == 1 else jnp.concatenate(per_img, axis=1)
        return jnp.concatenate([m, ones_row], axis=0)

    # ---- layer 1: conv3x3 + folded BN + bias + ReLU (one MXU matmul) --------
    xs = [x_ref[n] for n in range(NB)]
    patch1 = im2col(lambda n, t: xs[n][:, t:t + HWp])
    y1 = jnp.maximum(
        jnp.dot(w1_ref[...], patch1, preferred_element_type=jnp.float32), 0.0)

    # ---- repack y1 into the zero-padded layer-2 scratch (one masked store) ---
    y1m = y1 * mask_ref[...]
    for n in range(NB):
        base = n * pad_len
        # zero only the border lanes the shifted store does not cover
        xpad2_ref[:, base:base + Wp + 1] = jnp.zeros((Cmid, Wp + 1), jnp.float32)
        xpad2_ref[:, base + Wp + 1 + HWp:base + pad_len] = jnp.zeros(
            (Cmid, pad_len - (Wp + 1 + HWp)), jnp.float32)
        # single contiguous lane-shifted store of the whole (Cmid, H*Wp) block
        xpad2_ref[:, base + Wp + 1:base + Wp + 1 + HWp] = (
            y1m if NB == 1 else y1m[:, n * HWp:(n + 1) * HWp])

    # ---- layer 2: conv3x3 + folded BN + bias (ReLU in epilogue) --------------
    patch2 = im2col(
        lambda n, t: xpad2_ref[:, n * pad_len + t:n * pad_len + t + HWp])
    y2 = jnp.dot(w2_ref[...], patch2, preferred_element_type=jnp.float32)

    # ---- store padded result; the wrapper drops the junk columns -------------
    for n in range(NB):
        y2n = y2 if NB == 1 else y2[:, n * HWp:(n + 1) * HWp]
        o_ref[n] = jnp.maximum(y2n, 0.0).astype(o_ref.dtype)


def _fused_double_conv(x_flat, w1, w2, *, H, W, nb):
    """x_flat: (N, Cin, (H+2)*(W+2)+2) f32, padded + flattened by the wrapper."""
    N, Cin, pad_len = x_flat.shape
    Cmid, Cout = w1.shape[0], w2.shape[0]
    Wp, HWp = W + 2, H * (W + 2)
    assert pad_len == (H + 2) * Wp + 2
    assert N % nb == 0, "batch must be divisible by the per-step batch block"

    # 0/1 mask that zeroes the two junk columns per image row of the layer-1
    # result (trace-time numpy constant, tiny).
    keep = (np.arange(HWp) % Wp < W).astype(np.float32)
    mask = jnp.asarray(np.ascontiguousarray(
        np.broadcast_to(np.tile(keep, nb), (Cmid, nb * HWp))))

    kernel = functools.partial(_fused_double_conv_kernel, H=H, W=W, NB=nb)
    return pl.pallas_call(
        kernel,
        out_shape=jax.ShapeDtypeStruct((N, Cout, HWp), jnp.float32),
        grid_spec=pltpu.PrefetchScalarGridSpec(
            num_scalar_prefetch=0,
            grid=(N // nb,),
            in_specs=[
                pl.BlockSpec((nb, Cin, pad_len), lambda b: (b, 0, 0)),
                pl.BlockSpec((Cmid, 9 * Cin + 1), lambda b: (0, 0)),
                pl.BlockSpec((Cout, 9 * Cmid + 1), lambda b: (0, 0)),
                pl.BlockSpec((Cmid, nb * HWp), lambda b: (0, 0)),
            ],
            out_specs=pl.BlockSpec((nb, Cout, HWp), lambda b: (b, 0, 0)),
            scratch_shapes=[pltpu.VMEM((Cmid, nb * pad_len), jnp.float32)],
        ),
        compiler_params=pltpu.CompilerParams(dimension_semantics=("parallel",)),
    )(x_flat, w1, w2, mask)


@functools.partial(jax.jit, static_argnames=("nb",))
def unet_bottleneck_forward(x_nchw, fused_params, *, nb=1):
    """Forward pass of UnetBottleneck (DoubleConvBlock). Input/output NCHW.

    nb = images per grid step.  nb=1 -> grid=(N,) parallel (both v7x TCs busy);
    nb=N -> whole batch fused into a single step (single-TC v5e/v6e mode).
    """
    N, Cin, H, W = x_nchw.shape
    Cout = fused_params["w2"].shape[0]
    Wp = W + 2
    # Zero-pad spatially in XLA (moved out of the kernel per perf review), flatten
    # to the (H+2)*(W+2) "flat shift" layout, add 2 guard lanes for the last tap.
    xpad = jnp.pad(x_nchw.astype(jnp.float32), ((0, 0), (0, 0), (1, 1), (1, 1)))
    x_flat = jnp.pad(xpad.reshape(N, Cin, (H + 2) * Wp), ((0, 0), (0, 0), (0, 2)))
    y = _fused_double_conv(x_flat, fused_params["w1"], fused_params["w2"],
                           H=H, W=W, nb=nb)                     # (N, Cout, H*Wp)
    # Drop the two junk columns per row: free reshape + cheap slice in XLA.
    return y.reshape(N, Cout, H, Wp)[..., :W]


def make_params(key, base_channels=4, num_layers=2):
    in_ch = base_channels * 2 ** (num_layers - 1)
    out_ch = base_channels * 2 ** num_layers
    ks = jax.random.split(key, 8)

    def conv_params(kw, kb, cin, cout):
        w = jax.random.normal(kw, (3, 3, cin, cout), jnp.float32) * 0.1   # HWIO
        b = jax.random.normal(kb, (cout,), jnp.float32) * 0.1
        return w, b

    def bn_params(kg, kb, c):
        gamma = 1.0 + 0.1 * jax.random.normal(kg, (c,), jnp.float32)
        beta = 0.1 * jax.random.normal(kb, (c,), jnp.float32)
        rmean = 0.05 * jnp.arange(c, dtype=jnp.float32)
        rvar = 1.0 + 0.01 * jnp.arange(c, dtype=jnp.float32)
        return gamma, beta, rmean, rvar

    w1, b1 = conv_params(ks[0], ks[1], in_ch, out_ch)
    bn1 = bn_params(ks[2], ks[3], out_ch)
    w2, b2 = conv_params(ks[4], ks[5], out_ch, out_ch)
    bn2 = bn_params(ks[6], ks[7], out_ch)
    return dict(in_ch=in_ch, out_ch=out_ch, w1=w1, b1=b1, bn1=bn1, w2=w2, b2=b2, bn2=bn2)


def prepare_fused_params(params, eps=1e-5):
    """Fold eval-mode BatchNorm + conv bias into (Cout, 9*Cin+1) matmul operands.
    Done ONCE, outside the per-call path.  The last column is the folded bias,
    which pairs with the ones row appended to the im2col patch in the kernel."""
    def fold(w_hwio, b, bn):
        gamma, beta, mean, var = bn
        cin, cout = w_hwio.shape[2], w_hwio.shape[3]
        scale = gamma / jnp.sqrt(var + eps)                                # (Cout,)
        w_mat = jnp.transpose(w_hwio.reshape(9, cin, cout), (2, 0, 1))     # (Cout, 9, Cin)
        w_mat = w_mat.reshape(cout, 9 * cin) * scale[:, None]              # BN scale folded
        bias = (beta + (b - mean) * scale)[:, None]                        # (Cout, 1)
        return jnp.concatenate([w_mat, bias], axis=1).astype(jnp.float32)  # (Cout, 9*Cin+1)

    return dict(w1=fold(params["w1"], params["b1"], params["bn1"]),
                w2=fold(params["w2"], params["b2"], params["bn2"]))


def _reference_forward(x_nchw, params):
    """Pure-JAX reference (lax.conv) for correctness checking."""
    def conv_bn_relu(x, w_hwio, b, bn):
        y = lax.conv_general_dilated(
            x, w_hwio, window_strides=(1, 1), padding="SAME",
            dimension_numbers=("NCHW", "HWIO", "NCHW"))
        gamma, beta, rmean, rvar = bn
        scale = gamma / jnp.sqrt(rvar + 1e-5)
        bias = beta + (b - rmean) * scale
        y = y * scale[None, :, None, None] + bias[None, :, None, None]
        return jnp.maximum(y, 0.0)

    y = conv_bn_relu(x_nchw, params["w1"], params["b1"], params["bn1"])
    y = conv_bn_relu(y, params["w2"], params["b2"], params["bn2"])
    return y


if __name__ == "__main__":
    key = jax.random.PRNGKey(0)
    kx, kp = jax.random.split(key)

    base_channels, num_layers = 4, 2
    params = make_params(kp, base_channels, num_layers)
    fused = prepare_fused_params(params)       # BN + bias folded once
    in_ch = params["in_ch"]                    # 8

    N, H, W = 2, 16, 16
    x = jax.random.normal(kx, (N, in_ch, H, W), jnp.float32)   # NCHW, like PyTorch

    ref = jax.block_until_ready(_reference_forward(x, params))

    # nb=1: one image per parallel grid step (keeps both v7x TensorCores busy).
    out_split = jax.block_until_ready(unet_bottleneck_forward(x, fused, nb=1))
    # nb=N: whole batch in one grid step / one matmul per layer (v5e/v6e mode).
    out_fused = jax.block_until_ready(unet_bottleneck_forward(x, fused, nb=N))

    for name, out in (("nb=1", out_split), (f"nb={N}", out_fused)):
        if not jnp.allclose(out, ref, atol=1e-4, rtol=1e-4):
            err = float(jnp.max(jnp.abs(out - ref)))
            raise AssertionError(
                f"Pallas UnetBottleneck mismatch vs reference ({name}), max err {err}")

    print("KERNEL_OK")
</pallas_src>

<mosaic_0001>
module attributes {stable_mosaic.version = 11 : i64} {
  func.func @_fused_double_conv_kernel(%arg0: i32, %arg1: memref<1x8x326xf32, #tpu.memory_space<vmem>>, %arg2: memref<16x73xf32, #tpu.memory_space<vmem>>, %arg3: memref<16x145xf32, #tpu.memory_space<vmem>>, %arg4: memref<16x288xf32, #tpu.memory_space<vmem>>, %arg5: memref<1x16x288xf32, #tpu.memory_space<vmem>>, %arg6: memref<16x326xf32, #tpu.memory_space<vmem>>) attributes {dimension_semantics = [#tpu.dimension_semantics<parallel>], iteration_bounds = array<i64: 2>, scalar_prefetch = 0 : i64, scratch_operands = 1 : i64, tpu.core_type = #tpu.core_type<tc>, window_params = [{transform_indices = @transform_0, window_bounds = array<i64: 1, 8, 326>}, {pipeline_mode = #tpu.pipeline_mode<synchronous>, transform_indices = @transform_1, window_bounds = array<i64: 16, 73>}, {pipeline_mode = #tpu.pipeline_mode<synchronous>, transform_indices = @transform_2, window_bounds = array<i64: 16, 145>}, {pipeline_mode = #tpu.pipeline_mode<synchronous>, transform_indices = @transform_3, window_bounds = array<i64: 16, 288>}, {transform_indices = @transform_4, window_bounds = array<i64: 1, 16, 288>}]} {
    %cst = arith.constant 1.000000e+00 : f32
    %0 = vector.broadcast %cst : f32 to vector<1x288xf32>
    %c0 = arith.constant 0 : index
    %c0_0 = arith.constant 0 : index
    %c0_1 = arith.constant 0 : index
    %1 = vector.load %arg1[%c0, %c0_0, %c0_1] : memref<1x8x326xf32, #tpu.memory_space<vmem>>, vector<1x8x326xf32>
    %2 = vector.shape_cast %1 : vector<1x8x326xf32> to vector<8x326xf32>
    %3 = vector.extract_strided_slice %2 {offsets = [0, 0], sizes = [8, 288], strides = [1, 1]} : vector<8x326xf32> to vector<8x288xf32>
    %4 = vector.extract_strided_slice %2 {offsets = [0, 1], sizes = [8, 288], strides = [1, 1]} : vector<8x326xf32> to vector<8x288xf32>
    %5 = vector.extract_strided_slice %2 {offsets = [0, 2], sizes = [8, 288], strides = [1, 1]} : vector<8x326xf32> to vector<8x288xf32>
    %6 = vector.extract_strided_slice %2 {offsets = [0, 18], sizes = [8, 288], strides = [1, 1]} : vector<8x326xf32> to vector<8x288xf32>
    %7 = vector.extract_strided_slice %2 {offsets = [0, 19], sizes = [8, 288], strides = [1, 1]} : vector<8x326xf32> to vector<8x288xf32>
    %8 = vector.extract_strided_slice %2 {offsets = [0, 20], sizes = [8, 288], strides = [1, 1]} : vector<8x326xf32> to vector<8x288xf32>
    %9 = vector.extract_strided_slice %2 {offsets = [0, 36], sizes = [8, 288], strides = [1, 1]} : vector<8x326xf32> to vector<8x288xf32>
    %10 = vector.extract_strided_slice %2 {offsets = [0, 37], sizes = [8, 288], strides = [1, 1]} : vector<8x326xf32> to vector<8x288xf32>
    %11 = vector.extract_strided_slice %2 {offsets = [0, 38], sizes = [8, 288], strides = [1, 1]} : vector<8x326xf32> to vector<8x288xf32>
    %12 = tpu.concatenate %3, %4, %5, %6, %7, %8, %9, %10, %11 in 0 : vector<8x288xf32>, vector<8x288xf32>, vector<8x288xf32>, vector<8x288xf32>, vector<8x288xf32>, vector<8x288xf32>, vector<8x288xf32>, vector<8x288xf32>, vector<8x288xf32> -> vector<72x288xf32>
    %13 = tpu.concatenate %12, %0 in 0 : vector<72x288xf32>, vector<1x288xf32> -> vector<73x288xf32>
    %c0_2 = arith.constant 0 : index
    %c0_3 = arith.constant 0 : index
    %14 = vector.load %arg2[%c0_2, %c0_3] : memref<16x73xf32, #tpu.memory_space<vmem>>, vector<16x73xf32>
    %cst_4 = arith.constant dense<0.000000e+00> : vector<16x288xf32>
    %15 = tpu.matmul %14, %13, %cst_4 {dimension_numbers = #tpu.dot_dimension_numbers<[1], [0], [0], [1], [0, 0, 1, 1], [], []>} : vector<16x73xf32>, vector<73x288xf32>, vector<16x288xf32> -> vector<16x288xf32>
    %cst_5 = arith.constant 0.000000e+00 : f32
    %16 = vector.broadcast %cst_5 : f32 to vector<16x288xf32>
    %17 = arith.maximumf %15, %16 : vector<16x288xf32>
    %c0_6 = arith.constant 0 : index
    %c0_7 = arith.constant 0 : index
    %18 = vector.load %arg4[%c0_6, %c0_7] : memref<16x288xf32, #tpu.memory_space<vmem>>, vector<16x288xf32>
    %19 = arith.mulf %17, %18 : vector<16x288xf32>
    %cst_8 = arith.constant 0.000000e+00 : f32
    %20 = vector.broadcast %cst_8 : f32 to vector<16x19xf32>
    %c0_9 = arith.constant 0 : index
    %c0_10 = arith.constant 0 : index
    %21 = vector.load %arg6[%c0_9, %c0_10] : memref<16x326xf32, #tpu.memory_space<vmem>>, vector<16x19xf32>
    tpu.vector_store %arg6[%c0_9, %c0_10], %20 {strides = array<i32>} : memref<16x326xf32, #tpu.memory_space<vmem>>, vector<16x19xf32>,
    %cst_11 = arith.constant 0.000000e+00 : f32
    %22 = vector.broadcast %cst_11 : f32 to vector<16x19xf32>
    %c0_12 = arith.constant 0 : index
    %c307 = arith.constant 307 : index
    %23 = vector.load %arg6[%c0_12, %c307] : memref<16x326xf32, #tpu.memory_space<vmem>>, vector<16x19xf32>
    tpu.vector_store %arg6[%c0_12, %c307], %22 {strides = array<i32>} : memref<16x326xf32, #tpu.memory_space<vmem>>, vector<16x19xf32>,
    %c0_13 = arith.constant 0 : index
    %c19 = arith.constant 19 : index
    %24 = vector.load %arg6[%c0_13, %c19] : memref<16x326xf32, #tpu.memory_space<vmem>>, vector<16x288xf32>
    tpu.vector_store %arg6[%c0_13, %c19], %19 {strides = array<i32>} : memref<16x326xf32, #tpu.memory_space<vmem>>, vector<16x288xf32>,
    %c0_14 = arith.constant 0 : index
    %c0_15 = arith.constant 0 : index
    %25 = vector.load %arg6[%c0_14, %c0_15] : memref<16x326xf32, #tpu.memory_space<vmem>>, vector<16x288xf32>
    %c0_16 = arith.constant 0 : index
    %c1 = arith.constant 1 : index
    %26 = vector.load %arg6[%c0_16, %c1] : memref<16x326xf32, #tpu.memory_space<vmem>>, vector<16x288xf32>
    %c0_17 = arith.constant 0 : index
    %c2 = arith.constant 2 : index
    %27 = vector.load %arg6[%c0_17, %c2] : memref<16x326xf32, #tpu.memory_space<vmem>>, vector<16x288xf32>
    %c0_18 = arith.constant 0 : index
    %c18 = arith.constant 18 : index
    %28 = vector.load %arg6[%c0_18, %c18] : memref<16x326xf32, #tpu.memory_space<vmem>>, vector<16x288xf32>
    %c0_19 = arith.constant 0 : index
    %c19_20 = arith.constant 19 : index
    %29 = vector.load %arg6[%c0_19, %c19_20] : memref<16x326xf32, #tpu.memory_space<vmem>>, vector<16x288xf32>
    %c0_21 = arith.constant 0 : index
    %c20 = arith.constant 20 : index
    %30 = vector.load %arg6[%c0_21, %c20] : memref<16x326xf32, #tpu.memory_space<vmem>>, vector<16x288xf32>
    %c0_22 = arith.constant 0 : index
    %c36 = arith.constant 36 : index
    %31 = vector.load %arg6[%c0_22, %c36] : memref<16x326xf32, #tpu.memory_space<vmem>>, vector<16x288xf32>
    %c0_23 = arith.constant 0 : index
    %c37 = arith.constant 37 : index
    %32 = vector.load %arg6[%c0_23, %c37] : memref<16x326xf32, #tpu.memory_space<vmem>>, vector<16x288xf32>
    %c0_24 = arith.constant 0 : index
    %c38 = arith.constant 38 : index
    %33 = vector.load %arg6[%c0_24, %c38] : memref<16x326xf32, #tpu.memory_space<vmem>>, vector<16x288xf32>
    %34 = tpu.concatenate %25, %26, %27, %28, %29, %30, %31, %32, %33 in 0 : vector<16x288xf32>, vector<16x288xf32>, vector<16x288xf32>, vector<16x288xf32>, vector<16x288xf32>, vector<16x288xf32>, vector<16x288xf32>, vector<16x288xf32>, vector<16x288xf32> -> vector<144x288xf32>
    %35 = tpu.concatenate %34, %0 in 0 : vector<144x288xf32>, vector<1x288xf32> -> vector<145x288xf32>
    %c0_25 = arith.constant 0 : index
    %c0_26 = arith.constant 0 : index
    %36 = vector.load %arg3[%c0_25, %c0_26] : memref<16x145xf32, #tpu.memory_space<vmem>>, vector<16x145xf32>
    %cst_27 = arith.constant dense<0.000000e+00> : vector<16x288xf32>
    %37 = tpu.matmul %36, %35, %cst_27 {dimension_numbers = #tpu.dot_dimension_numbers<[1], [0], [0], [1], [0, 0, 1, 1], [], []>} : vector<16x145xf32>, vector<145x288xf32>, vector<16x288xf32> -> vector<16x288xf32>
    %cst_28 = arith.constant 0.000000e+00 : f32
    %38 = vector.broadcast %cst_28 : f32 to vector<16x288xf32>
    %39 = arith.maximumf %37, %38 : vector<16x288xf32>
    %c0_29 = arith.constant 0 : index
    %c0_30 = arith.constant 0 : index
    %c0_31 = arith.constant 0 : index
    %40 = vector.load %arg5[%c0_29, %c0_30, %c0_31] : memref<1x16x288xf32, #tpu.memory_space<vmem>>, vector<1x16x288xf32>
    %41 = vector.shape_cast %40 : vector<1x16x288xf32> to vector<16x288xf32>
    %42 = vector.shape_cast %39 : vector<16x288xf32> to vector<1x16x288xf32>
    tpu.vector_store %arg5[%c0_29, %c0_30, %c0_31], %42 {strides = array<i32>} : memref<1x16x288xf32, #tpu.memory_space<vmem>>, vector<1x16x288xf32>,
    return
  }
  func.func @transform_0(%arg0: i32) -> (i32, i32, i32) {
    %c0_i32 = arith.constant 0 : i32
    %c0_i32_0 = arith.constant 0 : i32
    %c0_i32_1 = arith.constant 0 : i32
    return %arg0, %c0_i32, %c0_i32_0 : i32, i32, i32
  }
  func.func @transform_1(%arg0: i32) -> (i32, i32) {
    %c0_i32 = arith.constant 0 : i32
    %c0_i32_0 = arith.constant 0 : i32
    %c0_i32_1 = arith.constant 0 : i32
    return %c0_i32, %c0_i32_0 : i32, i32
  }
  func.func @transform_2(%arg0: i32) -> (i32, i32) {
    %c0_i32 = arith.constant 0 : i32
    %c0_i32_0 = arith.constant 0 : i32
    %c0_i32_1 = arith.constant 0 : i32
    return %c0_i32, %c0_i32_0 : i32, i32
  }
  func.func @transform_3(%arg0: i32) -> (i32, i32) {
    %c0_i32 = arith.constant 0 : i32
    %c0_i32_0 = arith.constant 0 : i32
    %c0_i32_1 = arith.constant 0 : i32
    return %c0_i32, %c0_i32_0 : i32, i32
  }
  func.func @transform_4(%arg0: i32) -> (i32, i32, i32) {
    %c0_i32 = arith.constant 0 : i32
    %c0_i32_0 = arith.constant 0 : i32
    %c0_i32_1 = arith.constant 0 : i32
    return %arg0, %c0_i32, %c0_i32_0 : i32, i32, i32
  }
}

</mosaic_0001>

<bundles_post_ra>
// kernel: unet_bottleneck_forward.1
= control target key start
LH: loop header
LB: loop body
LE: loop exit
PB: predicated region body
PF: predicated region fallthrough
CT: control target
= control target key end

     0   :  { %s1067_s15 = smov 0   ;;  %s1474_s0 = inlined_call_operand.vmem [shape: f32[2,8,326], index: 0, kind: input, shape index: {}]   ;;  %s1475_s1 = inlined_call_operand.vmem [shape: f32[16,73], index: 1, kind: input, shape index: {}]   ;;  %s1476_s2 = inlined_call_operand.vmem [shape: f32[16,145], index: 2, kind: input, shape index: {}]   ;;  %s1477_s3 = inlined_call_operand.vmem [shape: f32[16,288], index: 3, kind: input, shape index: {}]   ;;  %s1478_s4 = inlined_call_operand.vmem [shape: f32[2,16,288], index: 4, kind: output, shape index: {}]  }
   0x1 LB: > { %s944_s16 = sadd.s32 4294967295, %s1029_s15   ;;  %p948_p0 = scmp.ge.s32.totalorder %s1029_s15, 1  ;;  %s1029_s15 = sphi %s1067_s15, %s14_s15  }
   0x2   : > { %p162_p1 = scmp.lt.s32.totalorder %s1029_s15, 3 }
   0x4   : > { %p163_p2 = pnand %p948_p0, %p162_p1 }
   0x5   : > { %p188_p3 = scmp.lt.s32.totalorder (!%p163_p2), %s944_s16, 1  ;;  %s1032_s21 = smov (!%p163_p2), 90  }
   0x6   : > { %166 = sbr.rel (%p163_p2) target bundleno = 923 (0x39b), region = 36  ;;  %s1033_s22 = smov (!%p163_p2), 91  }
   0x7   : > { %s1034_s23 = smov (!%p163_p2), 92   ;;  %s1035_s24 = smov (!%p163_p2), 108  }
   0x8   : > { %s1036_s25 = smov (!%p163_p2), 109   ;;  %s1037_s26 = smov (!%p163_p2), 110  }
   0x9   : > { %s1039_s29 = smov (!%p163_p2), 126   ;;  %s1040_s30 = smov (!%p163_p2), 127  }
   0xa   : > { %s1041_s13 = smov (!%p163_p2), 19  }
   0xb   : > { %vm309_vm0 = vcmask 1040384   ;;  %v1031_v0 = vmov 1.0   ;;  %s1480_s16 = smov (!%p188_p3, %s944_s16), 1  ;;  %v1134_v4 = vld [vmem:[%s1475_s1] sm:$0xff]  ;;  %vm302_vm1 = vcmask 596992   ;;  %v1038_v5 = vmov 0.0  }
   0xc   : > { %979 = vmatprep.subr.msk.mxu1 %vm309_vm0, %v1031_v0  ;;  %951 = vmatprep.subr.msk.mxu0 %vm309_vm0, %v1031_v0  ;;  %s1002_s17 = smul.u32 24, %s1480_s16  ;;  %vm294_vm2 = vcmask 736256   ;;  %vm282_vm3 = vcmask 744448   ;;  %vm270_vm4 = vcmask 752640   ;;  %vm258_vm5 = vcmask 883712   ;;  %v301_v46 = vld [vmem:[%s1475_s1 + $0x8] sm:$0xff] }
   0xd   : > { %980 = vmatpush3.msk.msra.mxu1 %vm309_vm0, %v1031_v0  ;;  %952 = vmatpush1.msk.msra.mxu0 %vm309_vm0, %v1031_v0  ;;  %vm246_vm6 = vcmask 891904   ;;  %vm234_vm7 = vcmask 900096   ;;  %vm222_vm8 = vcmask 1031168   ;;  %vm210_vm9 = vcmask 1039360   ;;  %v476_v48 = vld [vmem:[%s1477_s3 + $0x28] sm:$0xff]  ;;  %v471_v50 = vld [vmem:[%s1477_s3] sm:$0xff] }
   0xe   : > { %s192_s20 = scalar_lea.vmem %s1474_s0, %s1002_s17  ;;  %377 = vmatprep.mubr.f32.mxu0 %v1038_v5  ;;  %999 = vmatprep.mubr.msk.f32.mxu1 %vm302_vm1, %v1134_v4  ;;  %vm483_vm10 = vcmask 154624   ;;  %vm486_vm11 = vcmask 572824   ;;  %v474_v57 = vld [vmem:[%s1477_s3 + $0x18] sm:$0xff]  ;;  %v475_v61 = vld [vmem:[%s1477_s3 + $0x20] sm:$0xff]  ;;  %vm517_vm12 = vcmask 1047704   ;;  %vm520_vm13 = vcmask 416768  }
   0xf   : > { %v1089_v1 = vld [vmem:[%s192_s20 + $0x8] sm:$0xff]  ;;  %v1091_v2 = vld [vmem:[%s192_s20] sm:$0xff]  ;;  %v1097_v3 = vld [vmem:[%s192_s20 + $0x10] sm:$0xff]  ;;  %484 = vst.msk [vmem:[#allocation2] sm:$0xff] %vm483_vm10, %v1038_v5  ;;  %vm717_vm14 = vcmask 138240   ;;  %vm884_vm15 = vcmask 261120  }
  0x10   : > { %290 = vrot.lane.b32.xlu0 %v1089_v1, %s1032_s21  ;;  %288 = vrot.lane.b32.xlu1 %v1091_v2, %s1032_s21  ;;  %485 = vst.msk [vmem:[#allocation2 + $0x18] sm:$0xff] %vm483_vm10, %v1038_v5 }
  0x11   : > { %488 = vst.msk [vmem:[#allocation2 + $0x28] sm:$0xff] %vm486_vm11, %v1038_v5  ;;  %487 = vst.msk [vmem:[#allocation2 + $0x10] sm:$0xff] %vm486_vm11, %v1038_v5 }
  0x14   : > { %292 = vrot.lane.b32.xlu0 %v1097_v3, %s1032_s21  ;;  %278 = vrot.lane.b32.xlu1 %v1089_v1, %s1033_s22 }
  0x18   : > { %280 = vrot.lane.b32.xlu0 %v1097_v3, %s1033_s22  ;;  %276 = vrot.lane.b32.xlu1 %v1091_v2, %s1033_s22 }
  0x1c   : > { %266 = vrot.lane.b32.xlu0 %v1089_v1, %s1034_s23  ;;  %268 = vrot.lane.b32.xlu1 %v1097_v3, %s1034_s23 }
  0x20   : > { %264 = vrot.lane.b32.xlu0 %v1091_v2, %s1034_s23  ;;  %254 = vrot.lane.b32.xlu1 %v1089_v1, %s1035_s24 }
  0x24   : > { %256 = vrot.lane.b32.xlu0 %v1097_v3, %s1035_s24  ;;  %252 = vrot.lane.b32.xlu1 %v1091_v2, %s1035_s24 }
  0x28   : > { %242 = vrot.lane.b32.xlu0 %v1089_v1, %s1036_s25  ;;  %244 = vrot.lane.b32.xlu1 %v1097_v3, %s1036_s25 }
  0x2c   : > { %240 = vrot.lane.b32.xlu0 %v1091_v2, %s1036_s25  ;;  %230 = vrot.lane.b32.xlu1 %v1089_v1, %s1037_s26 }
  0x30   : > { %232 = vrot.lane.b32.xlu0 %v1097_v3, %s1037_s26  ;;  %228 = vrot.lane.b32.xlu1 %v1091_v2, %s1037_s26 }
  0x34   : > { %218 = vrot.lane.b32.xlu0 %v1089_v1, %s1039_s29  ;;  %220 = vrot.lane.b32.xlu1 %v1097_v3, %s1039_s29 }
  0x38   : > { %216 = vrot.lane.b32.xlu0 %v1091_v2, %s1039_s29  ;;  %206 = vrot.lane.b32.xlu1 %v1089_v1, %s1040_s30 }
  0x3c   : > { %208 = vrot.lane.b32.xlu0 %v1097_v3, %s1040_s30  ;;  %204 = vrot.lane.b32.xlu1 %v1091_v2, %s1040_s30 }
  0x82   : > { %v291_v6 = vpop.permute.xlu0 %290  ;;  %v289_v7 = vpop.permute.xlu1 %288 }
  0x83   : > { %v295_v11 = vsel %vm294_vm2, %v289_v7, %v291_v6 }
  0x86   : > { %v293_v8 = vpop.permute.xlu0 %292  ;;  %v279_v9 = vpop.permute.xlu1 %278 }
  0x87   : > { %981 = vmatprep.subr.mxu1 %v293_v8  ;;  %v296_v10 = vsel %vm294_vm2, %v291_v6, %v293_v8  ;;  %v473_v6 = vld [vmem:[%s1477_s3 + $0x10] sm:$0xff] }
  0x88   : > { %327 = vmatprep.subr.mxu0 %v296_v10  ;;  %982 = vmatpush3.msra.mxu1 %v293_v8 }
  0x89   : > { %328 = vmatpush1.msra.mxu0 %v295_v11 }
  0x8a   : > { %v281_v12 = vpop.permute.xlu0 %280  ;;  %v277_v13 = vpop.permute.xlu1 %276 }
  0x8b   : > { %983 = vmatprep.subr.mxu1 %v281_v12  ;;  %v284_v14 = vsel %vm282_vm3, %v279_v9, %v281_v12  ;;  %v283_v15 = vsel %vm282_vm3, %v277_v13, %v279_v9 }
  0x8c   : > { %329 = vmatprep.subr.mxu0 %v284_v14  ;;  %984 = vmatpush3.msra.mxu1 %v281_v12 }
  0x8d   : > { %330 = vmatpush1.msra.mxu0 %v283_v15 }
  0x8e   : > { %v267_v16 = vpop.permute.xlu0 %266  ;;  %v269_v17 = vpop.permute.xlu1 %268 }
  0x8f   : > { %985 = vmatprep.subr.mxu1 %v269_v17  ;;  %v272_v18 = vsel %vm270_vm4, %v267_v16, %v269_v17 }
  0x90   : > { %331 = vmatprep.subr.mxu0 %v272_v18  ;;  %986 = vmatpush3.msra.mxu1 %v269_v17 }
  0x92   : > { %v265_v19 = vpop.permute.xlu0 %264  ;;  %v255_v20 = vpop.permute.xlu1 %254 }
  0x93   : > { %v271_v21 = vsel %vm270_vm4, %v265_v19, %v267_v16 }
  0x94   : > { %332 = vmatpush1.msra.mxu0 %v271_v21 }
  0x96   : > { %v257_v22 = vpop.permute.xlu0 %256  ;;  %v253_v23 = vpop.permute.xlu1 %252 }
  0x97   : > { %987 = vmatprep.subr.mxu1 %v257_v22  ;;  %v260_v24 = vsel %vm258_vm5, %v255_v20, %v257_v22  ;;  %v259_v25 = vsel %vm258_vm5, %v253_v23, %v255_v20  ;;  %v714_v23 = vld [vmem:[%s1476_s2 + $0x8] sm:$0xff] }
  0x98   : > { %333 = vmatprep.subr.mxu0 %v260_v24  ;;  %988 = vmatpush3.msra.mxu1 %v257_v22 }
  0x99   : > { %334 = vmatpush1.msra.mxu0 %v259_v25 }
  0x9a   : > { %v243_v26 = vpop.permute.xlu0 %242  ;;  %v245_v27 = vpop.permute.xlu1 %244 }
  0x9b   : > { %989 = vmatprep.subr.mxu1 %v245_v27  ;;  %v248_v28 = vsel %vm246_vm6, %v243_v26, %v245_v27 }
  0x9c   : > { %335 = vmatprep.subr.mxu0 %v248_v28  ;;  %990 = vmatpush3.msra.mxu1 %v245_v27 }
  0x9e   : > { %v241_v29 = vpop.permute.xlu0 %240  ;;  %v231_v30 = vpop.permute.xlu1 %230 }
  0x9f   : > { %v247_v31 = vsel %vm246_vm6, %v241_v29, %v243_v26 }
  0xa0   : > { %336 = vmatpush1.msra.mxu0 %v247_v31 }
  0xa2   : > { %v233_v32 = vpop.permute.xlu0 %232  ;;  %v229_v33 = vpop.permute.xlu1 %228 }
  0xa3   : > { %991 = vmatprep.subr.mxu1 %v233_v32  ;;  %v236_v34 = vsel %vm234_vm7, %v231_v30, %v233_v32  ;;  %v235_v35 = vsel %vm234_vm7, %v229_v33, %v231_v30 }
  0xa4   : > { %337 = vmatprep.subr.mxu0 %v236_v34  ;;  %992 = vmatpush3.msra.mxu1 %v233_v32 }
  0xa5   : > { %338 = vmatpush1.msra.mxu0 %v235_v35 }
  0xa6   : > { %v219_v36 = vpop.permute.xlu0 %218  ;;  %v221_v37 = vpop.permute.xlu1 %220 }
  0xa7   : > { %993 = vmatprep.subr.mxu1 %v221_v37  ;;  %v224_v38 = vsel %vm222_vm8, %v219_v36, %v221_v37 }
  0xa8   : > { %339 = vmatprep.subr.mxu0 %v224_v38  ;;  %994 = vmatpush3.msra.mxu1 %v221_v37 }
  0xaa   : > { %v217_v39 = vpop.permute.xlu0 %216  ;;  %v207_v40 = vpop.permute.xlu1 %206 }
  0xab   : > { %v223_v41 = vsel %vm222_vm8, %v217_v39, %v219_v36 }
  0xac   : > { %340 = vmatpush1.msra.mxu0 %v223_v41 }
  0xae   : > { %v209_v42 = vpop.permute.xlu0 %208  ;;  %v205_v43 = vpop.permute.xlu1 %204 }
  0xaf   : > { %995 = vmatprep.subr.mxu1 %v209_v42  ;;  %v212_v44 = vsel %vm210_vm9, %v207_v40, %v209_v42  ;;  %v211_v45 = vsel %vm210_vm9, %v205_v43, %v207_v40 }
  0xb0   : > { %341 = vmatprep.subr.mxu0 %v212_v44  ;;  %996 = vmatpush3.msra.mxu1 %v209_v42 }
  0xb1   : > { %342 = vmatpush1.msra.mxu0 %v211_v45  ;;  %997 = vmatprep.subr.mxu1 %v1097_v3 }
  0xb2   : > { %343 = vmatprep.subr.mxu0 %v1089_v1  ;;  %998 = vmatpush3.msra.mxu1 %v1097_v3 }
  0xb3   : > { %344 = vmatpush1.msra.mxu0 %v1091_v2  ;;  %1000 = vmatmul.mubr.msk.f32.vlgmr.msra.gmra.mxu1 %vm302_vm1, %v301_v46  ;;  %v472_v2 = vld [vmem:[%s1477_s3 + $0x8] sm:$0xff] }
  0xb4   : > { %953 = vmatmul.mubr.msk.f32.vlgmr.msra.gmra.mxu0 %vm302_vm1, %v1134_v4  ;;  %801 = vmatprep.subr.mxu1 %v1038_v5 }
  0xb5   : > { %383 = vmatprep.mubr.f32.mxu0 %v1038_v5  ;;  %963 = vmatprep.mubr.msk.f32.mxu1 %vm717_vm14, %v714_v23 }
  0xb8   : > { %954 = vmatmul.mubr.msk.f32.gmra.mxu0 %vm302_vm1, %v301_v46 }
  0xb9   : > { %960 = vmatprep.mubr.msk.f32.mxu0 %vm717_vm14, %v714_v23 }
 0x173   : > { %v1001_v47 = vpop.f32.mrf.mxu1 }
 0x174   : > { %v379_v49 = vpop.f32.mrf.mxu0  ;;  %v470_v51 = vmax.f32 %v1001_v47, 0.0 }
 0x175   : > { %v465_v52 = vmax.f32 %v379_v49, 0.0  ;;  %v456_v59 = vpop.f32.mrf.mxu1 }
 0x176   : > { %v482_v53 = vmul.f32 %v476_v48, %v470_v51  ;;  %v381_v54 = vpop.f32.mrf.mxu0  ;;  %v467_v3 = vmax.f32 %v456_v59, 0.0 }
 0x177   : > { %v477_v55 = vmul.f32 %v471_v50, %v465_v52  ;;  %v466_v62 = vmax.f32 %v381_v54, 0.0 }
 0x178   : > { %v385_v56 = vpop.f32.mrf.mxu0  ;;  %505 = vrot.lane.b32.xlu0 %v482_v53, %s1041_s13  ;;  %v479_v8 = vmul.f32 %v473_v6, %v467_v3 }
 0x179   : > { %v468_v58 = vmax.f32 %v385_v56, 0.0  ;;  %495 = vrot.lane.b32.xlu1 %v477_v55, %s1041_s13  ;;  %v478_v7 = vmul.f32 %v472_v2, %v466_v62 }
 0x17a   : > { %v387_v60 = vpop.f32.mrf.mxu0 }
 0x17b   : > { %v480_v63 = vmul.f32 %v474_v57, %v468_v58  ;;  %v469_v1 = vmax.f32 %v387_v60, 0.0 }
 0x17d   : > { %v481_v4 = vmul.f32 %v475_v61, %v469_v1  ;;  %501 = vrot.lane.b32.xlu0 %v480_v63, %s1041_s13 }
 0x17f   : > { %503 = vrot.lane.b32.xlu1 %v481_v4, %s1041_s13 }
 0x181   : > { %497 = vrot.lane.b32.xlu0 %v478_v7, %s1041_s13 }
 0x183   : > { %499 = vrot.lane.b32.xlu1 %v479_v8, %s1041_s13 }
 0x1ea   : > { %v506_v9 = vpop.permute.xlu0 %505 }
 0x1eb   : > { %v496_v10 = vpop.permute.xlu1 %495 }
 0x1ec   : > { %518 = vst.msk [vmem:[#allocation2] sm:$0xff] %vm517_vm12, %v496_v10 }
 0x1ef   : > { %v502_v11 = vpop.permute.xlu0 %501 }
 0x1f0   : > { %522 = vst.msk [vmem:[#allocation2 + $0x18] sm:$0xff] %vm517_vm12, %v502_v11 }
 0x1f1   : > { %v504_v12 = vpop.permute.xlu1 %503 }
 0x1f2   : > { %v1205_v13 = vsel %vm483_vm10, %v502_v11, %v504_v12  ;;  %v510_v14 = vsel %vm483_vm10, %v504_v12, %v506_v9 }
 0x1f3   : > { %524 = vst.msk [vmem:[#allocation2 + $0x28] sm:$0xff] %vm520_vm13, %v510_v14  ;;  %v498_v15 = vpop.permute.xlu0 %497  ;;  %v1208_v16 = vld [vmem:[#allocation2] sm:$0xff] }
 0x1f4   : > { %v1211_v17 = vsel %vm483_vm10, %v496_v10, %v498_v15  ;;  %669 = vrot.lane.b32.xlu1 %v1208_v16, %s1033_s22 }
 0x1f5   : > { %v500_v18 = vpop.permute.xlu1 %499 }
 0x1f6   : > { %v508_v19 = vsel %vm483_vm10, %v498_v15, %v500_v18 }
 0x1f7   : > { %521 = vst.msk [vmem:[#allocation2 + $0x10] sm:$0xff] %vm520_vm13, %v508_v19  ;;  %v1250_v21 = vld [vmem:[#allocation2 + $0x18] sm:$0xff] }
 0x1f8   : > { %647 = vrot.lane.b32.xlu1 %v1208_v16, %s1034_s23 }
 0x1fa   : > { %v1266_v22 = vld [vmem:[#allocation2 + $0x28] sm:$0xff] }
 0x1fc   : > { %625 = vrot.lane.b32.xlu1 %v1208_v16, %s1035_s24 }
 0x1fe   : > { %v1220_v20 = vld [vmem:[#allocation2 + $0x10] sm:$0xff] }
 0x1ff   : > { %673 = vrot.lane.b32.xlu0 %v1220_v20, %s1033_s22 }
 0x200   : > { %603 = vrot.lane.b32.xlu1 %v1208_v16, %s1036_s25 }
 0x203   : > { %651 = vrot.lane.b32.xlu0 %v1220_v20, %s1034_s23 }
 0x204   : > { %581 = vrot.lane.b32.xlu1 %v1208_v16, %s1037_s26 }
 0x207   : > { %629 = vrot.lane.b32.xlu0 %v1220_v20, %s1035_s24 }
 0x208   : > { %559 = vrot.lane.b32.xlu1 %v1208_v16, %s1039_s29 }
 0x20b   : > { %607 = vrot.lane.b32.xlu0 %v1220_v20, %s1036_s25 }
 0x20c   : > { %671 = vrot.lane.b32.xlu1 %v1211_v17, %s1033_s22 }
 0x20f   : > { %585 = vrot.lane.b32.xlu0 %v1220_v20, %s1037_s26 }
 0x210   : > { %649 = vrot.lane.b32.xlu1 %v1211_v17, %s1034_s23 }
 0x213   : > { %563 = vrot.lane.b32.xlu0 %v1220_v20, %s1039_s29 }
 0x214   : > { %627 = vrot.lane.b32.xlu1 %v1211_v17, %s1035_s24 }
 0x217   : > { %541 = vrot.lane.b32.xlu0 %v1220_v20, %s1040_s30 }
 0x218   : > { %605 = vrot.lane.b32.xlu1 %v1211_v17, %s1036_s25 }
 0x21b   : > { %675 = vrot.lane.b32.xlu0 %v1250_v21, %s1033_s22 }
 0x21c   : > { %583 = vrot.lane.b32.xlu1 %v1211_v17, %s1037_s26 }
 0x21f   : > { %653 = vrot.lane.b32.xlu0 %v1250_v21, %s1034_s23 }
 0x220   : > { %561 = vrot.lane.b32.xlu1 %v1211_v17, %s1039_s29 }
 0x223   : > { %631 = vrot.lane.b32.xlu0 %v1250_v21, %s1035_s24 }
 0x224   : > { %539 = vrot.lane.b32.xlu1 %v1211_v17, %s1040_s30 }
 0x227   : > { %609 = vrot.lane.b32.xlu0 %v1250_v21, %s1036_s25 }
 0x228   : > { %679 = vrot.lane.b32.xlu1 %v1266_v22, %s1033_s22 }
 0x22b   : > { %587 = vrot.lane.b32.xlu0 %v1250_v21, %s1037_s26 }
 0x22c   : > { %657 = vrot.lane.b32.xlu1 %v1266_v22, %s1034_s23 }
 0x22f   : > { %565 = vrot.lane.b32.xlu0 %v1250_v21, %s1039_s29 }
 0x230   : > { %635 = vrot.lane.b32.xlu1 %v1266_v22, %s1035_s24 }
 0x233   : > { %543 = vrot.lane.b32.xlu0 %v1250_v21, %s1040_s30 }
 0x234   : > { %613 = vrot.lane.b32.xlu1 %v1266_v22, %s1036_s25 }
 0x237   : > { %677 = vrot.lane.b32.xlu0 %v1205_v13, %s1033_s22 }
 0x238   : > { %591 = vrot.lane.b32.xlu1 %v1266_v22, %s1037_s26 }
 0x23b   : > { %655 = vrot.lane.b32.xlu0 %v1205_v13, %s1034_s23 }
 0x23c   : > { %569 = vrot.lane.b32.xlu1 %v1266_v22, %s1039_s29 }
 0x23f   : > { %633 = vrot.lane.b32.xlu0 %v1205_v13, %s1035_s24 }
 0x240   : > { %547 = vrot.lane.b32.xlu1 %v1266_v22, %s1040_s30 }
 0x243   : > { %611 = vrot.lane.b32.xlu0 %v1205_v13, %s1036_s25 }
 0x244   : > { %537 = vrot.lane.b32.xlu1 %v1208_v16, %s1040_s30 }
 0x247   : > { %589 = vrot.lane.b32.xlu0 %v1205_v13, %s1037_s26 }
 0x248   : > { %693 = vrot.lane.b32.xlu1 %v1211_v17, %s1032_s21 }
 0x24b   : > { %567 = vrot.lane.b32.xlu0 %v1205_v13, %s1039_s29 }
 0x24c   : > { %701 = vrot.lane.b32.xlu1 %v1266_v22, %s1032_s21 }
 0x24f   : > { %545 = vrot.lane.b32.xlu0 %v1205_v13, %s1040_s30  ;;  %s1003_s30 = smul.u32 48, %s1480_s16 }
 0x250   : > { %691 = vrot.lane.b32.xlu1 %v1208_v16, %s1032_s21 }
 0x251   : > { %s197_s7 = scalar_lea.vmem %s1478_s4, %s1003_s30 }
 0x253   : > { %697 = vrot.lane.b32.xlu0 %v1250_v21, %s1032_s21 }
 0x257   : > { %699 = vrot.lane.b32.xlu0 %v1205_v13, %s1032_s21 }
 0x25b   : > { %695 = vrot.lane.b32.xlu0 %v1220_v20, %s1032_s21 }
 0x266   : > { %v670_v24 = vpop.permute.xlu1 %669 }
 0x26a   : > { %v1321_v25 = vpop.permute.xlu1 %647 }
 0x26e   : > { %v1323_v26 = vpop.permute.xlu1 %625 }
 0x271   : > { %v674_v27 = vpop.permute.xlu0 %673 }
 0x272   : > { %v1325_v28 = vpop.permute.xlu1 %603 }
 0x275   : > { %v1327_v29 = vpop.permute.xlu0 %651 }
 0x276   : > { %v1329_v30 = vpop.permute.xlu1 %581 }
 0x279   : > { %v1331_v31 = vpop.permute.xlu0 %629 }
 0x27a   : > { %v1333_v32 = vpop.permute.xlu1 %559 }
 0x27d   : > { %v1335_v33 = vpop.permute.xlu0 %607 }
 0x27e   : > { %v672_v34 = vpop.permute.xlu1 %671 }
 0x27f   : > { %v682_v59 = vsel %vm282_vm3, %v672_v34, %v674_v27  ;;  %v681_v60 = vsel %vm282_vm3, %v670_v24, %v672_v34 }
 0x281   : > { %v1337_v35 = vpop.permute.xlu0 %585 }
 0x282   : > { %v650_v36 = vpop.permute.xlu1 %649 }
 0x283   : > { %v660_v2 = vsel %vm270_vm4, %v650_v36, %v1327_v29  ;;  %v659_v3 = vsel %vm270_vm4, %v1321_v25, %v650_v36 }
 0x285   : > { %v1339_v37 = vpop.permute.xlu0 %563 }
 0x286   : > { %v1341_v38 = vpop.permute.xlu1 %627 }
 0x287   : > { %v638_v9 = vsel %vm258_vm5, %v1341_v38, %v1331_v31  ;;  %v637_v10 = vsel %vm258_vm5, %v1323_v26, %v1341_v38 }
 0x289   : > { %v1343_v39 = vpop.permute.xlu0 %541 }
 0x28a   : > { %v1345_v40 = vpop.permute.xlu1 %605 }
 0x28b   : > { %v616_v18 = vsel %vm246_vm6, %v1345_v40, %v1335_v33  ;;  %v615_v19 = vsel %vm246_vm6, %v1325_v28, %v1345_v40 }
 0x28d   : > { %v676_v41 = vpop.permute.xlu0 %675 }
 0x28e   : > { %v1347_v42 = vpop.permute.xlu1 %583 }
 0x28f   : > { %v594_v26 = vsel %vm234_vm7, %v1347_v42, %v1337_v35 }
 0x291   : > { %v654_v43 = vpop.permute.xlu0 %653 }
 0x292   : > { %v1349_v44 = vpop.permute.xlu1 %561 }
 0x295   : > { %v632_v45 = vpop.permute.xlu0 %631 }
 0x296   : > { %v1351_v46 = vpop.permute.xlu1 %539 }
 0x299   : > { %v1353_v47 = vpop.permute.xlu0 %609 }
 0x29a   : > { %v680_v48 = vpop.permute.xlu1 %679 }
 0x29b   : > { %802 = vmatpush1.msra.mxu1 %v680_v48 }
 0x29c   : > { %803 = vmatprep.subr.mxu1 %v1038_v5 }
 0x29d   : > { %v1356_v49 = vpop.permute.xlu0 %587  ;;  %804 = vmatpush1.msra.mxu1 %v674_v27 }
 0x29e   : > { %805 = vmatprep.subr.mxu1 %v1038_v5  ;;  %v658_v50 = vpop.permute.xlu1 %657 }
 0x29f   : > { %806 = vmatpush1.msra.mxu1 %v658_v50 }
 0x2a0   : > { %807 = vmatprep.subr.mxu1 %v1038_v5 }
 0x2a1   : > { %v1360_v51 = vpop.permute.xlu0 %565  ;;  %808 = vmatpush1.msra.mxu1 %v1327_v29 }
 0x2a2   : > { %809 = vmatprep.subr.mxu1 %v1038_v5  ;;  %v636_v52 = vpop.permute.xlu1 %635 }
 0x2a3   : > { %810 = vmatpush1.msra.mxu1 %v636_v52 }
 0x2a4   : > { %811 = vmatprep.subr.mxu1 %v1038_v5 }
 0x2a5   : > { %v1365_v53 = vpop.permute.xlu0 %543  ;;  %812 = vmatpush1.msra.mxu1 %v1331_v31 }
 0x2a6   : > { %813 = vmatprep.subr.mxu1 %v1038_v5  ;;  %v614_v54 = vpop.permute.xlu1 %613 }
 0x2a7   : > { %814 = vmatpush1.msra.mxu1 %v614_v54 }
 0x2a8   : > { %815 = vmatprep.subr.mxu1 %v1038_v5 }
 0x2a9   : > { %v678_v55 = vpop.permute.xlu0 %677  ;;  %816 = vmatpush1.msra.mxu1 %v1335_v33  ;;  %v572_v33 = vsel %vm222_vm8, %v1349_v44, %v1339_v37 }
 0x2aa   : > { %v683_v56 = vsel %vm282_vm3, %v676_v41, %v678_v55  ;;  %817 = vmatprep.subr.mxu1 %v1038_v5  ;;  %v592_v57 = vpop.permute.xlu1 %591  ;;  %v684_v58 = vsel %vm282_vm3, %v678_v55, %v680_v48 }
 0x2ab   : > { %724 = vmatprep.subr.mxu0 %v684_v58  ;;  %818 = vmatpush1.msra.mxu1 %v592_v57 }
 0x2ac   : > { %725 = vmatpush1.msra.mxu0 %v683_v56  ;;  %819 = vmatprep.subr.mxu1 %v1038_v5 }
 0x2ad   : > { %v656_v61 = vpop.permute.xlu0 %655  ;;  %726 = vmatprep.subr.mxu0 %v682_v59  ;;  %820 = vmatpush1.msra.mxu1 %v1337_v35 }
 0x2ae   : > { %v661_v62 = vsel %vm270_vm4, %v654_v43, %v656_v61  ;;  %727 = vmatpush1.msra.mxu0 %v681_v60  ;;  %821 = vmatprep.subr.mxu1 %v1038_v5  ;;  %v570_v63 = vpop.permute.xlu1 %569  ;;  %v662_v1 = vsel %vm270_vm4, %v656_v61, %v658_v50 }
 0x2af   : > { %728 = vmatprep.subr.mxu0 %v662_v1  ;;  %822 = vmatpush1.msra.mxu1 %v570_v63 }
 0x2b0   : > { %729 = vmatpush1.msra.mxu0 %v661_v62  ;;  %823 = vmatprep.subr.mxu1 %v1038_v5 }
 0x2b1   : > { %v634_v4 = vpop.permute.xlu0 %633  ;;  %730 = vmatprep.subr.mxu0 %v660_v2  ;;  %824 = vmatpush1.msra.mxu1 %v1339_v37  ;;  %v550_v37 = vsel %vm210_vm9, %v1351_v46, %v1343_v39 }
 0x2b2   : > { %v639_v6 = vsel %vm258_vm5, %v632_v45, %v634_v4  ;;  %731 = vmatpush1.msra.mxu0 %v659_v3  ;;  %825 = vmatprep.subr.mxu1 %v1038_v5  ;;  %v548_v7 = vpop.permute.xlu1 %547  ;;  %v640_v8 = vsel %vm258_vm5, %v634_v4, %v636_v52 }
 0x2b3   : > { %732 = vmatprep.subr.mxu0 %v640_v8  ;;  %826 = vmatpush1.msra.mxu1 %v548_v7 }
 0x2b4   : > { %733 = vmatpush1.msra.mxu0 %v639_v6  ;;  %827 = vmatprep.subr.mxu1 %v1038_v5 }
 0x2b5   : > { %v612_v11 = vpop.permute.xlu0 %611  ;;  %734 = vmatprep.subr.mxu0 %v638_v9  ;;  %828 = vmatpush1.msra.mxu1 %v1343_v39 }
 0x2b6   : > { %v617_v12 = vsel %vm246_vm6, %v1353_v47, %v612_v11  ;;  %735 = vmatpush1.msra.mxu0 %v637_v10  ;;  %829 = vmatprep.subr.mxu1 %v1038_v5  ;;  %v538_v14 = vpop.permute.xlu1 %537  ;;  %v618_v15 = vsel %vm246_vm6, %v612_v11, %v614_v54 }
 0x2b7   : > { %736 = vmatprep.subr.mxu0 %v618_v15  ;;  %830 = vmatpush1.msra.mxu1 %v1266_v22 }
 0x2b8   : > { %737 = vmatpush1.msra.mxu0 %v617_v12  ;;  %831 = vmatprep.subr.mxu1 %v1038_v5 }
 0x2b9   : > { %v590_v23 = vpop.permute.xlu0 %589  ;;  %738 = vmatprep.subr.mxu0 %v616_v18  ;;  %832 = vmatpush1.msra.mxu1 %v1220_v20  ;;  %v593_v20 = vsel %vm234_vm7, %v1329_v30, %v1347_v42  ;;  %v571_v30 = vsel %vm222_vm8, %v1333_v32, %v1349_v44  ;;  %v715_v42 = vld [vmem:[%s1476_s2 + $0x10] sm:$0xff] }
 0x2ba   : > { %v595_v24 = vsel %vm234_vm7, %v1356_v49, %v590_v23  ;;  %739 = vmatpush1.msra.mxu0 %v615_v19  ;;  %v694_v22 = vpop.permute.xlu1 %693  ;;  %v596_v25 = vsel %vm234_vm7, %v590_v23, %v592_v57  ;;  %859 = vmatprep.subr.mxu1 %v1038_v5 }
 0x2bb   : > { %740 = vmatprep.subr.mxu0 %v596_v25  ;;  %962 = vmatpush2.msk.msra.mxu1 %vm309_vm0, %v1031_v0 }
 0x2bc   : > { %741 = vmatpush1.msra.mxu0 %v595_v24  ;;  %861 = vmatprep.subr.mxu1 %v1038_v5 }
 0x2bd   : > { %v568_v27 = vpop.permute.xlu0 %567  ;;  %742 = vmatprep.subr.mxu0 %v594_v26 }
 0x2be   : > { %v573_v28 = vsel %vm222_vm8, %v1360_v51, %v568_v27  ;;  %743 = vmatpush1.msra.mxu0 %v593_v20  ;;  %v702_v29 = vpop.permute.xlu1 %701  ;;  %v574_v31 = vsel %vm222_vm8, %v568_v27, %v570_v63 }
 0x2bf   : > { %744 = vmatprep.subr.mxu0 %v574_v31  ;;  %862 = vmatpush2.msra.mxu1 %v702_v29 }
 0x2c0   : > { %745 = vmatpush1.msra.mxu0 %v573_v28  ;;  %863 = vmatprep.subr.mxu1 %v1038_v5  ;;  %v549_v5 = vsel %vm210_vm9, %v538_v14, %v1351_v46 }
 0x2c1   : > { %v546_v34 = vpop.permute.xlu0 %545  ;;  %746 = vmatprep.subr.mxu0 %v572_v33 }
 0x2c2   : > { %v551_v35 = vsel %vm210_vm9, %v1365_v53, %v546_v34  ;;  %747 = vmatpush1.msra.mxu0 %v571_v30  ;;  %v552_v36 = vsel %vm210_vm9, %v546_v34, %v548_v7  ;;  %v692_v40 = vpop.permute.xlu1 %691 }
 0x2c3   : > { %748 = vmatprep.subr.mxu0 %v552_v36 }
 0x2c4   : > { %749 = vmatpush1.msra.mxu0 %v551_v35 }
 0x2c5   : > { %v698_v38 = vpop.permute.xlu0 %697  ;;  %750 = vmatprep.subr.mxu0 %v550_v37 }
 0x2c6   : > { %751 = vmatpush1.msra.mxu0 %v549_v5 }
 0x2c7   : > { %752 = vmatprep.subr.mxu0 %v1205_v13  ;;  %v713_v13 = vld [vmem:[%s1476_s2] sm:$0xff] }
 0x2c8   : > { %753 = vmatpush1.msra.mxu0 %v1250_v21 }
 0x2c9   : > { %v700_v32 = vpop.permute.xlu0 %699  ;;  %754 = vmatprep.subr.mxu0 %v1211_v17 }
 0x2ca   : > { %755 = vmatpush1.msra.mxu0 %v1208_v16  ;;  %v706_v39 = vsel %vm294_vm2, %v700_v32, %v702_v29  ;;  %v705_v21 = vsel %vm294_vm2, %v698_v38, %v700_v32  ;;  %v716_v16 = vld [vmem:[%s1476_s2 + $0x18] sm:$0xff] }
 0x2cb   : > { %958 = vmatprep.subr.msk.mxu0 %vm309_vm0, %v1031_v0 }
 0x2cc   : > { %959 = vmatpush2.msk.msra.mxu0 %vm309_vm0, %v1031_v0  ;;  %v703_v0 = vsel %vm294_vm2, %v692_v40, %v694_v22 }
 0x2cd   : > { %v696_v41 = vpop.permute.xlu0 %695  ;;  %784 = vmatprep.subr.mxu0 %v706_v39 }
 0x2ce   : > { %785 = vmatpush2.msra.mxu0 %v705_v21  ;;  %864 = vmatpush2.msra.mxu1 %v696_v41  ;;  %v704_v17 = vsel %vm294_vm2, %v694_v22, %v696_v41 }
 0x2cf   : > { %786 = vmatprep.subr.mxu0 %v704_v17  ;;  %866 = vmatmul.mubr.f32.vlgmr.msra.gmra.mxu1 %v713_v13 }
 0x2d0   : > { %787 = vmatpush2.msra.mxu0 %v703_v0  ;;  %964 = vmatprep.mubr.msk.f32.mxu1 %vm717_vm14, %v716_v16 }
 0x2d1   : > { %789 = vmatmul.mubr.f32.vlgmr.msra.gmra.mxu0 %v713_v13 }
 0x2d2   : > { %961 = vmatprep.mubr.msk.f32.mxu0 %vm717_vm14, %v716_v16 }
 0x2d3   : > { %871 = vmatmul.mubr.f32.gmra.mxu1 %v715_v42 }
 0x2d5   : > { %795 = vmatmul.mubr.f32.gmra.mxu0 %v715_v42 }
 0x38f   : > { %v867_v43 = vpop.f32.mrf.mxu1 }
 0x390   : > { %v878_v44 = vmax.f32 %v867_v43, 0.0 }
 0x391   : > { %v790_v45 = vpop.f32.mrf.mxu0  ;;  %v869_v46 = vpop.f32.mrf.mxu1 }
 0x392   : > { %v876_v47 = vmax.f32 %v790_v45, 0.0  ;;  %885 = vst.msk [vmem:[%s197_s7 + $0x10] sm:$0xff] %vm884_vm15, %v878_v44 }
 0x393   : > { %v792_v48 = vpop.f32.mrf.mxu0  ;;  %v872_v49 = vpop.f32.mrf.mxu1 }
 0x394   : > { %882 = vst [vmem:[%s197_s7] sm:$0xff] %v876_v47  ;;  %v877_v50 = vmax.f32 %v792_v48, 0.0  ;;  %v881_v51 = vmax.f32 %v872_v49, 0.0 }
 0x395   : > { %v796_v52 = vpop.f32.mrf.mxu0  ;;  %v874_v53 = vpop.f32.mrf.mxu1 }
 0x396   : > { %883 = vst [vmem:[%s197_s7 + $0x8] sm:$0xff] %v877_v50  ;;  %v879_v54 = vmax.f32 %v796_v52, 0.0  ;;  %888 = vst.msk [vmem:[%s197_s7 + $0x28] sm:$0xff] %vm884_vm15, %v881_v51 }
 0x397   : > { %v798_v55 = vpop.f32.mrf.mxu0 }
 0x398   : > { %886 = vst [vmem:[%s197_s7 + $0x18] sm:$0xff] %v879_v54  ;;  %v880_v56 = vmax.f32 %v798_v55, 0.0 }
 0x39a   : > { %887 = vst [vmem:[%s197_s7 + $0x20] sm:$0xff] %v880_v56 }
 0x39b PF: > { %s14_s15 = sadd.s32 1, %s1029_s15  }
 0x39c   : > { %p11_p4 = scmp.ge.s32.totalorder %s14_s15, 4  }
 0x39e   :  { %13 = sbr.rel (!%p11_p4) target bundleno = 1 (0x1), region = 66 }

</bundles_post_ra>
